<compile_context>
chip_gen: v7x
topology: tpu7x:2x2x1
jax: 0.10.0
libtpu: 0.0.40
codegen_flags: <defaults>
</compile_context>

<pallas_src>
import functools

import jax
import jax.numpy as jnp
from jax import lax
from jax.experimental import pallas as pl
from jax.experimental.pallas import tpu as pltpu


def _adaptive_bounds(in_size, out_size):
    """PyTorch AdaptiveAvgPool2d window bounds: [floor(i*I/O), ceil((i+1)*I/O))."""
    starts = [(i * in_size) // out_size for i in range(out_size)]
    ends = [-(-((i + 1) * in_size) // out_size) for i in range(out_size)]
    return list(zip(starts, ends))


def _round_up(x, m):
    return -(-x // m) * m


def _pick_h_tiles(bg, h, pad):
    """Pick an H split so the grid has >=2 steps when the batch grid alone doesn't."""
    if bg >= 2:
        return 1
    for nt in (8, 4, 2):
        if h % nt == 0 and h // nt >= max(8, 2 * pad):
            return nt
    return 1


def semeu_kernel(taps_ref, xw_ref, w_ref, bias_ref, out_ref, *, Th, W, K):
    """One grid step = one (packed sample group, H tile).

    taps_ref: (1, K*K, 1, CP)     pooled dynamic-conv taps (f32)
    xw_ref:   (1, Th+2p, Wp, CP)  x tile, halo-padded along H and W
    w_ref:    (CP, CP)            block-diagonal 1x1 weight, BN scale folded in
    bias_ref: (1, CP)             folded BN bias (f32)
    out_ref:  (1, Th, W, CP)
    """
    pad = K // 2
    CP = out_ref.shape[-1]

    # --- per-sample dynamic depthwise conv: value-level 9-tap accumulate in f32
    #     vregs.  No scratch, no read-modify-write traffic; one offset load per
    #     kx, reused across ky via leading-dim slices.
    acc = None
    for kx in range(K):
        xk = xw_ref[0, :, kx:kx + W, :].astype(jnp.float32)      # (Th+2p, W, CP)
        for ky in range(K):
            tap = taps_ref[0, ky * K + kx].astype(jnp.float32).reshape(1, 1, CP)
            term = xk[ky:ky + Th] * tap
            acc = term if acc is None else acc + term

    # --- 1x1 pointwise conv on the MXU (BN scale folded into w_ref),
    #     bias + ReLU + residual; single lane-dense store per step.
    y = acc.reshape(Th * W, CP).astype(w_ref.dtype)
    z = jnp.dot(y, w_ref[...], preferred_element_type=jnp.float32)
    z = jnp.maximum(z + bias_ref[...], 0.0)
    resid = xw_ref[0, pad:pad + Th, pad:pad + W, :].astype(jnp.float32)
    z = z + resid.reshape(Th * W, CP)
    out_ref[0] = z.reshape(Th, W, CP).astype(out_ref.dtype)


def semeu_forward(sem_nchw, x_nchw, conv_w, bn_gamma, bn_beta, bn_mean, bn_var,
                  *, kernel=3, eps=1e-5, activation_dtype=jnp.float32):
    """SemEU forward.  Inputs are PyTorch-layout NCHW; conv_w is (C_out, C_in, 1, 1)."""
    B, C, Hs, Ws = sem_nchw.shape
    _, _, H, W = x_nchw.shape
    K = kernel
    pad = K // 2

    # ---- adaptive-avg-pool taps (tiny: B*C*K*K), computed once outside the kernel.
    hb = _adaptive_bounds(Hs, K)
    wb = _adaptive_bounds(Ws, K)
    taps = jnp.stack(
        [jnp.stack([sem_nchw[:, :, h0:h1, w0:w1].mean(axis=(2, 3)) for (w0, w1) in wb],
                   axis=-1) for (h0, h1) in hb],
        axis=-2)                                                  # (B, C, K, K)

    # ---- lane packing: G samples' channels on the 128-lane dim; pad B so any
    #      batch size stays on the packed-lane fast path.
    G = min(max(1, 128 // C), B) if C <= 128 else 1
    Bp = _round_up(B, G)
    if Bp != B:
        bpad = ((0, Bp - B), (0, 0), (0, 0), (0, 0))
        x_nchw_p = jnp.pad(x_nchw, bpad)
        taps = jnp.pad(taps, bpad)
    else:
        x_nchw_p = x_nchw
    CP = G * C
    Bg = Bp // G

    # Single layout transform each way: NCHW -> packed channels-last.
    x_packed = jnp.transpose(x_nchw_p.reshape(Bg, G, C, H, W),
                             (0, 3, 4, 1, 2)).reshape(Bg, H, W, CP)
    taps_packed = jnp.transpose(taps.reshape(Bg, G, C, K, K),
                                (0, 3, 4, 1, 2)).reshape(Bg, K * K, 1, CP)

    # ---- halo padding: H by `pad` each side; W by `pad` plus up to a multiple of 8.
    Wp = _round_up(W + 2 * pad, 8)
    x_hw = jnp.pad(x_packed, ((0, 0), (pad, pad), (pad, Wp - W - pad), (0, 0)))

    # ---- H tiling so the grid has >=2 steps (DMA overlap + 2-TC sharding on v7x).
    nt = _pick_h_tiles(Bg, H, pad)
    Th = H // nt
    Thp = Th + 2 * pad
    x_tiles = jnp.stack([x_hw[:, t * Th:t * Th + Thp] for t in range(nt)],
                        axis=1).reshape(Bg * nt, Thp, Wp, CP).astype(activation_dtype)
    taps_steps = jnp.repeat(taps_packed, nt, axis=0).astype(jnp.float32)
    S = Bg * nt

    # ---- 1x1 conv weight with eval-mode BN scale folded in; block-diagonal so
    #      packed samples never mix channels.
    inv_std = 1.0 / jnp.sqrt(bn_var + eps)
    scale = bn_gamma * inv_std                                    # (C,)
    bias = bn_beta - bn_mean * scale                              # (C,)
    wt_scaled = conv_w[:, :, 0, 0].T * scale[None, :]             # (C_in, C_out)
    wbig = jnp.kron(jnp.eye(G, dtype=wt_scaled.dtype),
                    wt_scaled).astype(activation_dtype)           # (CP, CP)
    bias_big = jnp.tile(bias, G).reshape(1, CP).astype(jnp.float32)

    # ---- explicit VMEM budget: double-buffered blocks + weights + margin.
    asize = jnp.dtype(activation_dtype).itemsize
    x_blk = Thp * Wp * CP * asize
    out_blk = Th * _round_up(W, 8) * CP * asize
    taps_blk = K * K * 8 * CP * 4
    w_blk = CP * CP * asize + 8 * CP * 4
    needed = 2 * (x_blk + out_blk + taps_blk + w_blk) + (2 << 20)
    vmem_limit = int(min(64 << 20, max(2 * needed, 16 << 20)))

    kern = functools.partial(semeu_kernel, Th=Th, W=W, K=K)

    out_tiles = pl.pallas_call(
        kern,
        out_shape=jax.ShapeDtypeStruct((S, Th, W, CP), activation_dtype),
        grid_spec=pltpu.PrefetchScalarGridSpec(
            num_scalar_prefetch=0,
            grid=(S,),
            in_specs=[
                pl.BlockSpec((1, K * K, 1, CP), lambda s: (s, 0, 0, 0)),
                pl.BlockSpec((1, Thp, Wp, CP), lambda s: (s, 0, 0, 0)),
                pl.BlockSpec((CP, CP), lambda s: (0, 0)),
                pl.BlockSpec((1, CP), lambda s: (0, 0)),
            ],
            out_specs=pl.BlockSpec((1, Th, W, CP), lambda s: (s, 0, 0, 0)),
        ),
        compiler_params=pltpu.CompilerParams(
            dimension_semantics=("parallel",),
            vmem_limit_bytes=vmem_limit,
        ),
    )(taps_steps, x_tiles, wbig, bias_big)

    # ---- unpack: (Bg*nt, Th, W, CP) -> NCHW, drop batch padding.
    out = out_tiles.reshape(Bg, H, W, G, C)
    out = jnp.transpose(out, (0, 3, 4, 1, 2)).reshape(Bp, C, H, W)[:B]
    return out.astype(x_nchw.dtype)


def semeu_reference(sem_nchw, x_nchw, conv_w, bn_gamma, bn_beta, bn_mean, bn_var,
                    *, kernel=3, eps=1e-5):
    """Pure-JAX reference mirroring the PyTorch module (eval-mode BN)."""
    B, C, Hs, Ws = sem_nchw.shape
    hb = _adaptive_bounds(Hs, kernel)
    wb = _adaptive_bounds(Ws, kernel)
    k = jnp.stack(
        [jnp.stack([sem_nchw[:, :, h0:h1, w0:w1].mean(axis=(2, 3)) for (w0, w1) in wb],
                   axis=-1) for (h0, h1) in hb],
        axis=-2)  # (B, C, K, K)

    outs = []
    for i in range(B):
        xi = x_nchw[i:i + 1]
        ki = k[i].reshape(C, 1, kernel, kernel)
        yi = lax.conv_general_dilated(
            xi, ki, window_strides=(1, 1),
            padding=[(kernel // 2, kernel // 2)] * 2,
            feature_group_count=C,
            dimension_numbers=('NCHW', 'OIHW', 'NCHW'))
        outs.append(yi)
    y = jnp.concatenate(outs, axis=0)

    z = jnp.einsum('oc,bchw->bohw', conv_w[:, :, 0, 0], y)
    z = (z - bn_mean[None, :, None, None]) / jnp.sqrt(bn_var[None, :, None, None] + eps)
    z = z * bn_gamma[None, :, None, None] + bn_beta[None, :, None, None]
    z = jnp.maximum(z, 0.0)
    return z + x_nchw


if __name__ == "__main__":
    key = jax.random.PRNGKey(0)
    B, C, H, W = 4, 32, 16, 16       # B=4, C=32 -> 4-sample lane pack (CP=128)
    Hs, Ws = 16, 16

    ks = jax.random.split(key, 7)
    sem = jax.random.normal(ks[0], (B, C, Hs, Ws), jnp.float32)
    x = jax.random.normal(ks[1], (B, C, H, W), jnp.float32)
    # Deterministic synthetic parameters (module __init__ shapes):
    conv_w = 0.1 * jax.random.normal(ks[2], (C, C, 1, 1), jnp.float32)   # Conv2d(C,C,1,bias=False)
    bn_gamma = 1.0 + 0.1 * jax.random.normal(ks[3], (C,), jnp.float32)   # BatchNorm2d(C)
    bn_beta = 0.1 * jax.random.normal(ks[4], (C,), jnp.float32)
    bn_mean = 0.1 * jax.random.normal(ks[5], (C,), jnp.float32)
    bn_var = jnp.abs(jax.random.normal(ks[6], (C,), jnp.float32)) + 0.5

    out = semeu_forward(sem, x, conv_w, bn_gamma, bn_beta, bn_mean, bn_var)
    out = jax.block_until_ready(out)

    ref = semeu_reference(sem, x, conv_w, bn_gamma, bn_beta, bn_mean, bn_var)
    err = float(jnp.max(jnp.abs(out - ref)))
    assert out.shape == (B, C, H, W)
    assert jnp.allclose(out, ref, rtol=1e-4, atol=1e-4), f"max abs err {err}"
    print("KERNEL_OK")
</pallas_src>

<mosaic_0001>
module attributes {stable_mosaic.version = 11 : i64} {
  func.func @semeu_kernel(%arg0: i32, %arg1: memref<1x9x1x128xf32, #tpu.memory_space<vmem>>, %arg2: memref<1x10x24x128xf32, #tpu.memory_space<vmem>>, %arg3: memref<128x128xf32, #tpu.memory_space<vmem>>, %arg4: memref<1x128xf32, #tpu.memory_space<vmem>>, %arg5: memref<1x8x16x128xf32, #tpu.memory_space<vmem>>) attributes {dimension_semantics = [#tpu.dimension_semantics<parallel>], iteration_bounds = array<i64: 2>, scalar_prefetch = 0 : i64, scratch_operands = 0 : i64, tpu.core_type = #tpu.core_type<tc>, window_params = [{transform_indices = @transform_0, window_bounds = array<i64: 1, 9, 1, 128>}, {transform_indices = @transform_1, window_bounds = array<i64: 1, 10, 24, 128>}, {pipeline_mode = #tpu.pipeline_mode<synchronous>, transform_indices = @transform_2, window_bounds = array<i64: 128, 128>}, {pipeline_mode = #tpu.pipeline_mode<synchronous>, transform_indices = @transform_3, window_bounds = array<i64: 1, 128>}, {transform_indices = @transform_4, window_bounds = array<i64: 1, 8, 16, 128>}]} {
    %c0 = arith.constant 0 : index
    %c0_0 = arith.constant 0 : index
    %c0_1 = arith.constant 0 : index
    %c0_2 = arith.constant 0 : index
    %0 = vector.load %arg2[%c0, %c0_0, %c0_1, %c0_2] : memref<1x10x24x128xf32, #tpu.memory_space<vmem>>, vector<1x10x16x128xf32>
    %1 = vector.shape_cast %0 : vector<1x10x16x128xf32> to vector<10x16x128xf32>
    %c0_3 = arith.constant 0 : index
    %c0_4 = arith.constant 0 : index
    %c0_5 = arith.constant 0 : index
    %c0_6 = arith.constant 0 : index
    %2 = vector.load %arg1[%c0_3, %c0_4, %c0_5, %c0_6] : memref<1x9x1x128xf32, #tpu.memory_space<vmem>>, vector<1x1x1x128xf32>
    %3 = vector.shape_cast %2 : vector<1x1x1x128xf32> to vector<1x128xf32>
    %4 = vector.shape_cast %3 : vector<1x128xf32> to vector<1x1x128xf32>
    %5 = vector.extract_strided_slice %1 {offsets = [0, 0, 0], sizes = [8, 16, 128], strides = [1, 1, 1]} : vector<10x16x128xf32> to vector<8x16x128xf32>
    %6 = vector.broadcast %4 : vector<1x1x128xf32> to vector<8x16x128xf32>
    %7 = arith.mulf %5, %6 : vector<8x16x128xf32>
    %c0_7 = arith.constant 0 : index
    %c3 = arith.constant 3 : index
    %c0_8 = arith.constant 0 : index
    %c0_9 = arith.constant 0 : index
    %8 = vector.load %arg1[%c0_7, %c3, %c0_8, %c0_9] : memref<1x9x1x128xf32, #tpu.memory_space<vmem>>, vector<1x1x1x128xf32>
    %9 = vector.shape_cast %8 : vector<1x1x1x128xf32> to vector<1x128xf32>
    %10 = vector.shape_cast %9 : vector<1x128xf32> to vector<1x1x128xf32>
    %11 = vector.extract_strided_slice %1 {offsets = [1, 0, 0], sizes = [8, 16, 128], strides = [1, 1, 1]} : vector<10x16x128xf32> to vector<8x16x128xf32>
    %12 = vector.broadcast %10 : vector<1x1x128xf32> to vector<8x16x128xf32>
    %13 = arith.mulf %11, %12 : vector<8x16x128xf32>
    %14 = arith.addf %7, %13 : vector<8x16x128xf32>
    %c0_10 = arith.constant 0 : index
    %c6 = arith.constant 6 : index
    %c0_11 = arith.constant 0 : index
    %c0_12 = arith.constant 0 : index
    %15 = vector.load %arg1[%c0_10, %c6, %c0_11, %c0_12] : memref<1x9x1x128xf32, #tpu.memory_space<vmem>>, vector<1x1x1x128xf32>
    %16 = vector.shape_cast %15 : vector<1x1x1x128xf32> to vector<1x128xf32>
    %17 = vector.shape_cast %16 : vector<1x128xf32> to vector<1x1x128xf32>
    %18 = vector.extract_strided_slice %1 {offsets = [2, 0, 0], sizes = [8, 16, 128], strides = [1, 1, 1]} : vector<10x16x128xf32> to vector<8x16x128xf32>
    %19 = vector.broadcast %17 : vector<1x1x128xf32> to vector<8x16x128xf32>
    %20 = arith.mulf %18, %19 : vector<8x16x128xf32>
    %21 = arith.addf %14, %20 : vector<8x16x128xf32>
    %c0_13 = arith.constant 0 : index
    %c0_14 = arith.constant 0 : index
    %c1 = arith.constant 1 : index
    %c0_15 = arith.constant 0 : index
    %22 = vector.load %arg2[%c0_13, %c0_14, %c1, %c0_15] : memref<1x10x24x128xf32, #tpu.memory_space<vmem>>, vector<1x10x16x128xf32>
    %23 = vector.shape_cast %22 : vector<1x10x16x128xf32> to vector<10x16x128xf32>
    %c0_16 = arith.constant 0 : index
    %c1_17 = arith.constant 1 : index
    %c0_18 = arith.constant 0 : index
    %c0_19 = arith.constant 0 : index
    %24 = vector.load %arg1[%c0_16, %c1_17, %c0_18, %c0_19] : memref<1x9x1x128xf32, #tpu.memory_space<vmem>>, vector<1x1x1x128xf32>
    %25 = vector.shape_cast %24 : vector<1x1x1x128xf32> to vector<1x128xf32>
    %26 = vector.shape_cast %25 : vector<1x128xf32> to vector<1x1x128xf32>
    %27 = vector.extract_strided_slice %23 {offsets = [0, 0, 0], sizes = [8, 16, 128], strides = [1, 1, 1]} : vector<10x16x128xf32> to vector<8x16x128xf32>
    %28 = vector.broadcast %26 : vector<1x1x128xf32> to vector<8x16x128xf32>
    %29 = arith.mulf %27, %28 : vector<8x16x128xf32>
    %30 = arith.addf %21, %29 : vector<8x16x128xf32>
    %c0_20 = arith.constant 0 : index
    %c4 = arith.constant 4 : index
    %c0_21 = arith.constant 0 : index
    %c0_22 = arith.constant 0 : index
    %31 = vector.load %arg1[%c0_20, %c4, %c0_21, %c0_22] : memref<1x9x1x128xf32, #tpu.memory_space<vmem>>, vector<1x1x1x128xf32>
    %32 = vector.shape_cast %31 : vector<1x1x1x128xf32> to vector<1x128xf32>
    %33 = vector.shape_cast %32 : vector<1x128xf32> to vector<1x1x128xf32>
    %34 = vector.extract_strided_slice %23 {offsets = [1, 0, 0], sizes = [8, 16, 128], strides = [1, 1, 1]} : vector<10x16x128xf32> to vector<8x16x128xf32>
    %35 = vector.broadcast %33 : vector<1x1x128xf32> to vector<8x16x128xf32>
    %36 = arith.mulf %34, %35 : vector<8x16x128xf32>
    %37 = arith.addf %30, %36 : vector<8x16x128xf32>
    %c0_23 = arith.constant 0 : index
    %c7 = arith.constant 7 : index
    %c0_24 = arith.constant 0 : index
    %c0_25 = arith.constant 0 : index
    %38 = vector.load %arg1[%c0_23, %c7, %c0_24, %c0_25] : memref<1x9x1x128xf32, #tpu.memory_space<vmem>>, vector<1x1x1x128xf32>
    %39 = vector.shape_cast %38 : vector<1x1x1x128xf32> to vector<1x128xf32>
    %40 = vector.shape_cast %39 : vector<1x128xf32> to vector<1x1x128xf32>
    %41 = vector.extract_strided_slice %23 {offsets = [2, 0, 0], sizes = [8, 16, 128], strides = [1, 1, 1]} : vector<10x16x128xf32> to vector<8x16x128xf32>
    %42 = vector.broadcast %40 : vector<1x1x128xf32> to vector<8x16x128xf32>
    %43 = arith.mulf %41, %42 : vector<8x16x128xf32>
    %44 = arith.addf %37, %43 : vector<8x16x128xf32>
    %c0_26 = arith.constant 0 : index
    %c0_27 = arith.constant 0 : index
    %c2 = arith.constant 2 : index
    %c0_28 = arith.constant 0 : index
    %45 = vector.load %arg2[%c0_26, %c0_27, %c2, %c0_28] : memref<1x10x24x128xf32, #tpu.memory_space<vmem>>, vector<1x10x16x128xf32>
    %46 = vector.shape_cast %45 : vector<1x10x16x128xf32> to vector<10x16x128xf32>
    %c0_29 = arith.constant 0 : index
    %c2_30 = arith.constant 2 : index
    %c0_31 = arith.constant 0 : index
    %c0_32 = arith.constant 0 : index
    %47 = vector.load %arg1[%c0_29, %c2_30, %c0_31, %c0_32] : memref<1x9x1x128xf32, #tpu.memory_space<vmem>>, vector<1x1x1x128xf32>
    %48 = vector.shape_cast %47 : vector<1x1x1x128xf32> to vector<1x128xf32>
    %49 = vector.shape_cast %48 : vector<1x128xf32> to vector<1x1x128xf32>
    %50 = vector.extract_strided_slice %46 {offsets = [0, 0, 0], sizes = [8, 16, 128], strides = [1, 1, 1]} : vector<10x16x128xf32> to vector<8x16x128xf32>
    %51 = vector.broadcast %49 : vector<1x1x128xf32> to vector<8x16x128xf32>
    %52 = arith.mulf %50, %51 : vector<8x16x128xf32>
    %53 = arith.addf %44, %52 : vector<8x16x128xf32>
    %c0_33 = arith.constant 0 : index
    %c5 = arith.constant 5 : index
    %c0_34 = arith.constant 0 : index
    %c0_35 = arith.constant 0 : index
    %54 = vector.load %arg1[%c0_33, %c5, %c0_34, %c0_35] : memref<1x9x1x128xf32, #tpu.memory_space<vmem>>, vector<1x1x1x128xf32>
    %55 = vector.shape_cast %54 : vector<1x1x1x128xf32> to vector<1x128xf32>
    %56 = vector.shape_cast %55 : vector<1x128xf32> to vector<1x1x128xf32>
    %57 = vector.extract_strided_slice %46 {offsets = [1, 0, 0], sizes = [8, 16, 128], strides = [1, 1, 1]} : vector<10x16x128xf32> to vector<8x16x128xf32>
    %58 = vector.broadcast %56 : vector<1x1x128xf32> to vector<8x16x128xf32>
    %59 = arith.mulf %57, %58 : vector<8x16x128xf32>
    %60 = arith.addf %53, %59 : vector<8x16x128xf32>
    %c0_36 = arith.constant 0 : index
    %c8 = arith.constant 8 : index
    %c0_37 = arith.constant 0 : index
    %c0_38 = arith.constant 0 : index
    %61 = vector.load %arg1[%c0_36, %c8, %c0_37, %c0_38] : memref<1x9x1x128xf32, #tpu.memory_space<vmem>>, vector<1x1x1x128xf32>
    %62 = vector.shape_cast %61 : vector<1x1x1x128xf32> to vector<1x128xf32>
    %63 = vector.shape_cast %62 : vector<1x128xf32> to vector<1x1x128xf32>
    %64 = vector.extract_strided_slice %46 {offsets = [2, 0, 0], sizes = [8, 16, 128], strides = [1, 1, 1]} : vector<10x16x128xf32> to vector<8x16x128xf32>
    %65 = vector.broadcast %63 : vector<1x1x128xf32> to vector<8x16x128xf32>
    %66 = arith.mulf %64, %65 : vector<8x16x128xf32>
    %67 = arith.addf %60, %66 : vector<8x16x128xf32>
    %68 = vector.shape_cast %67 : vector<8x16x128xf32> to vector<128x128xf32>
    %c0_39 = arith.constant 0 : index
    %c0_40 = arith.constant 0 : index
    %69 = vector.load %arg3[%c0_39, %c0_40] : memref<128x128xf32, #tpu.memory_space<vmem>>, vector<128x128xf32>
    %cst = arith.constant dense<0.000000e+00> : vector<128x128xf32>
    %70 = tpu.matmul %68, %69, %cst {dimension_numbers = #tpu.dot_dimension_numbers<[1], [0], [0], [1], [0, 0, 1, 1], [], []>} : vector<128x128xf32>, vector<128x128xf32>, vector<128x128xf32> -> vector<128x128xf32>
    %c0_41 = arith.constant 0 : index
    %c0_42 = arith.constant 0 : index
    %71 = vector.load %arg4[%c0_41, %c0_42] : memref<1x128xf32, #tpu.memory_space<vmem>>, vector<1x128xf32>
    %72 = vector.broadcast %71 : vector<1x128xf32> to vector<128x128xf32>
    %73 = arith.addf %70, %72 : vector<128x128xf32>
    %cst_43 = arith.constant 0.000000e+00 : f32
    %74 = vector.broadcast %cst_43 : f32 to vector<128x128xf32>
    %75 = arith.maximumf %73, %74 : vector<128x128xf32>
    %c0_44 = arith.constant 0 : index
    %c1_45 = arith.constant 1 : index
    %c1_46 = arith.constant 1 : index
    %c0_47 = arith.constant 0 : index
    %76 = vector.load %arg2[%c0_44, %c1_45, %c1_46, %c0_47] : memref<1x10x24x128xf32, #tpu.memory_space<vmem>>, vector<1x8x16x128xf32>
    %77 = vector.shape_cast %76 : vector<1x8x16x128xf32> to vector<8x16x128xf32>
    %78 = vector.shape_cast %77 : vector<8x16x128xf32> to vector<128x128xf32>
    %79 = arith.addf %75, %78 : vector<128x128xf32>
    %80 = vector.shape_cast %79 : vector<128x128xf32> to vector<8x16x128xf32>
    %c0_48 = arith.constant 0 : index
    %c0_49 = arith.constant 0 : index
    %c0_50 = arith.constant 0 : index
    %c0_51 = arith.constant 0 : index
    %81 = vector.load %arg5[%c0_48, %c0_49, %c0_50, %c0_51] : memref<1x8x16x128xf32, #tpu.memory_space<vmem>>, vector<1x8x16x128xf32>
    %82 = vector.shape_cast %81 : vector<1x8x16x128xf32> to vector<8x16x128xf32>
    %83 = vector.shape_cast %80 : vector<8x16x128xf32> to vector<1x8x16x128xf32>
    tpu.vector_store %arg5[%c0_48, %c0_49, %c0_50, %c0_51], %83 {strides = array<i32>} : memref<1x8x16x128xf32, #tpu.memory_space<vmem>>, vector<1x8x16x128xf32>,
    return
  }
  func.func @transform_0(%arg0: i32) -> (i32, i32, i32, i32) {
    %c0_i32 = arith.constant 0 : i32
    %c0_i32_0 = arith.constant 0 : i32
    %c0_i32_1 = arith.constant 0 : i32
    %c0_i32_2 = arith.constant 0 : i32
    return %arg0, %c0_i32, %c0_i32_0, %c0_i32_1 : i32, i32, i32, i32
  }
  func.func @transform_1(%arg0: i32) -> (i32, i32, i32, i32) {
    %c0_i32 = arith.constant 0 : i32
    %c0_i32_0 = arith.constant 0 : i32
    %c0_i32_1 = arith.constant 0 : i32
    %c0_i32_2 = arith.constant 0 : i32
    return %arg0, %c0_i32, %c0_i32_0, %c0_i32_1 : i32, i32, i32, i32
  }
  func.func @transform_2(%arg0: i32) -> (i32, i32) {
    %c0_i32 = arith.constant 0 : i32
    %c0_i32_0 = arith.constant 0 : i32
    %c0_i32_1 = arith.constant 0 : i32
    return %c0_i32, %c0_i32_0 : i32, i32
  }
  func.func @transform_3(%arg0: i32) -> (i32, i32) {
    %c0_i32 = arith.constant 0 : i32
    %c0_i32_0 = arith.constant 0 : i32
    %c0_i32_1 = arith.constant 0 : i32
    return %c0_i32, %c0_i32_0 : i32, i32
  }
  func.func @transform_4(%arg0: i32) -> (i32, i32, i32, i32) {
    %c0_i32 = arith.constant 0 : i32
    %c0_i32_0 = arith.constant 0 : i32
    %c0_i32_1 = arith.constant 0 : i32
    %c0_i32_2 = arith.constant 0 : i32
    return %arg0, %c0_i32, %c0_i32_0, %c0_i32_1 : i32, i32, i32, i32
  }
}

</mosaic_0001>

<bundles_post_ra>
// kernel: tpu_custom_call.1
= control target key start
LH: loop header
LB: loop body
LE: loop exit
PB: predicated region body
PF: predicated region fallthrough
CT: control target
= control target key end

     0   :  { %s2307_s0 = inlined_call_operand.hbm [shape: f32[2,9,1,128], index: 0, kind: input, shape index: {}]   ;;  %s2308_s1 = inlined_call_operand.hbm [shape: f32[2,10,24,128], index: 1, kind: input, shape index: {}]   ;;  %s2309_s2 = inlined_call_operand.hbm [shape: f32[128,128], index: 2, kind: input, shape index: {}]   ;;  %s2310_s3 = inlined_call_operand.vmem [shape: f32[1,128], index: 3, kind: input, shape index: {}]   ;;  %s2311_s4 = inlined_call_operand.hbm [shape: f32[2,8,16,128], index: 4, kind: output, shape index: {}]  }
   0x1   :  { %2328 = sst [smem:[#allocation22_spill]] %s2307_s0 }
   0x2   :  { %2329 = sst [smem:[#allocation23_spill]] %s2309_s2 }
   0x3   :  { %9 = vsyncpa [#allocation3], 0 }
   0x4   :  { %11 = vsyncpa [#allocation3 + $0x1], 0 }
   0x5   :  { %12 = vsyncpa [#allocation6], 0 }
   0x6   :  { %14 = vsyncpa [#allocation6 + $0x1], 0 }
   0x7   :  { %15 = vsyncpa [#allocation4], 0 }
   0x8   :  { %17 = vsyncpa [#allocation4 + $0x1], 0  ;;  %s1483_s15 = smov 0   ;;  %s1485_s16 = smov 0  }
   0x9   :  { %s1487_s17 = smov 0   ;;  %s1489_s18 = smov 0  }
   0xa LB: > { %s1504_s19 = sadd.s32 4294967295, %s1446_s18   ;;  %s1025_s20 = sadd.s32 4294967294, %s1446_s18   ;;  %s1446_s18 = sphi %s1489_s18, %s2368_s18   ;;  %s1442_s17 = sphi %s1487_s17, %s2367_s17   ;;  %s1438_s16 = sphi %s1485_s16, %s2366_s16   ;;  %s1434_s15 = sphi %s1483_s15, %s2365_s15  }
   0xb   : > { %p43_p0 = scmp.ne.s32.totalorder %s1438_s16, %s1434_s15  ;;  %p2312_p1 = scmp.eq.s32.totalorder %s1504_s19, 0 }
   0xc   : > { %p141_p3 = scmp.eq.s32.totalorder %s1025_s20, 1  ;;  %p1026_p5 = scmp.ge.s32.totalorder %s1446_s18, 1 }
   0xd   : > { %p1513_p4 = por %p2312_p1, %p43_p0  ;;  %p148_p7 = scmp.lt.s32.totalorder %s1446_s18, 3 }
   0xe   : > { %p1518_p6 = por %p141_p3, %p43_p0  ;;  %s1448_s24 = smov [#allocation7]  }
   0xf   : > { %s2330_s21 = scalar_select %p1513_p4, 1, 0 }
  0x10   : > { %s2331_s22 = scalar_select %p1518_p6, 1, 0 }
  0x11   : > { %p1523_p8 = pnand %p1026_p5, %p148_p7  ;;  %s160_s25 = sshll.u32 %s1448_s24, 4  ;;  %s1527_s25 = int_to_ptr.vmem [resolvable:$true] %s160_s25 }
  0x12   : > { %s1539_s27 = sadd.s32 1, %s1446_s18   ;;  %s30_s28 = sadd.s32 1, %s1442_s17 }
  0x13   : > { %s2332_s23 = scalar_select %p1523_p8, 1, 0 }
  0x14   : > { %p1226_p9 = pneg %p1523_p8  ;;  %s27_s29 = ssub.s32 %s1446_s18, %s1539_s27 }
  0x15   : > { %s2334_s2 = sld [smem:[#allocation23_spill]] }
  0x16   : > { %p1534_p11 = pnand %p1226_p9, %p2312_p1 }
  0x18   : > { %p1286_p13 = pneg %p1534_p11 }
  0x1b   : > { %s1284_s6 = scalar_lea.hbm %s2334_s2, 2048 }
  0x1c   : > { %p1285_p12 = scmp.ne.s32.totalorder %s2334_s2, %s1284_s6  ;;  %p1291_p5 = scmp.lt.u32.totalorder %s1284_s6, %s2334_s2 }
  0x1e   : > { %p1287_p0 = pnand %p1286_p13, %p1285_p12 }
  0x20   : > { %p1288_p3 = pneg %p1287_p0 }
  0x22   : > { %p1293_p7 = pnand %p1291_p5, %p1288_p3 }
  0x24   : > { %1296 = shalt.err (!%p1293_p7)
}
  0x25   : > { %s1297_s11 = scalar_lea.vmem %s1527_s25, 2048  ;;  %p1305_p2 = scmp.lt.s32.totalorder %s1527_s25, %s1527_s25 }
  0x26   : > { %p1298_p9 = scmp.ne.s32.totalorder %s1527_s25, %s1297_s11  ;;  %p1306_p6 = scmp.lt.s32.totalorder %s1297_s11, %s1297_s11 }
  0x28   : > { %p1300_p10 = pnand %p1298_p9, %p1286_p13  ;;  %p1307_p4 = por %p1306_p6, %p1305_p2 }
  0x2a   : > { %p1301_p1 = pneg %p1300_p10 }
  0x2c   : > { %p1308_p8 = pnand %p1307_p4, %p1301_p1 }
  0x2e   : > { %1311 = shalt.err (!%p1308_p8)
}
  0x2f   : > { %s2315_s12 = smov 128   ;;  %s2316_s13 = smov 8  }
  0x30   : > { %1229 = dma.hbm_to_vmem [thread:$0]  (!%p1534_p11), %s2334_s2, 2048, %s1527_s25, [#allocation6], %s2315_s12, %s2315_s12, %s2316_s13  }
  0x31   : > { %p28_p1 = scmp.eq.s32.totalorder %s27_s29, 0  ;;  %p37_p2 = scmp.ne.s32.totalorder %s1442_s17, %s1438_s16 }
  0x32   : > { %p38_p4 = scmp.eq.s32.totalorder %s1446_s18, 0  ;;  %p1242_p6 = scmp.lt.s32.totalorder %s1446_s18, 2 }
  0x33   : > { %s1573_s24 = scalar_select %p28_p1, %s1442_s17, %s30_s28  }
  0x34   : > { %p39_p8 = por %p38_p4, %p37_p2  ;;  %p2335_p10 = scmp.eq.s32.totalorder %s1504_s19, 1 }
  0x35   : > { %s1582_s26 = sand.u32 1, %s1442_s17   ;;  %s1211_s5 = smul.u32 144, %s1446_s18 }
  0x36   : > { %p1577_p12 = por %p2335_p10, %p37_p2  ;;  %s1210_s6 = smul.u32 9, %s1582_s26 }
  0x37   : > { %s2337_s0 = sld [smem:[#allocation22_spill]]  ;;  %p1591_p11 = pnand %p1242_p6, %p39_p8 }
  0x38   : > { %s181_s8 = scalar_lea.vmem [#allocation2], %s1210_s6  ;;  %s178_s10 = scalar_lea.sflag [#allocation3], %s1582_s26 }
  0x39   : > { %s188_s9 = sshll.u32 %s181_s8, 4  ;;  %p1314_p0 = pneg %p1591_p11  ;;  %s1595_s9 = int_to_ptr.vmem [resolvable:$true] %s188_s9 }
  0x3d   : > { %s1589_s29 = scalar_lea.hbm %s2337_s0, %s1211_s5  ;;  %s1317_s5 = scalar_lea.hbm %s2337_s0, 288 }
  0x3e   : > { %s1312_s11 = scalar_lea.hbm %s1589_s29, 144  ;;  %p1318_p7 = scmp.lt.u32.totalorder %s1589_s29, %s2337_s0 }
  0x3f   : > { %p1313_p13 = scmp.ne.s32.totalorder %s1589_s29, %s1312_s11  ;;  %p1319_p9 = scmp.lt.u32.totalorder %s1317_s5, %s1312_s11 }
  0x40   : > { %p1321_p2 = scmp.lt.u32.totalorder %s1312_s11, %s1589_s29 }
  0x41   : > { %p1315_p3 = pnand %p1314_p0, %p1313_p13  ;;  %p1320_p1 = por %p1319_p9, %p1318_p7 }
  0x43   : > { %p1316_p5 = pneg %p1315_p3  ;;  %p1322_p4 = por %p1321_p2, %p1320_p1 }
  0x45   : > { %p1323_p6 = pnand %p1322_p4, %p1316_p5 }
  0x47   : > { %1326 = shalt.err (!%p1323_p6)
}
  0x48   : > { %s1327_s6 = scalar_lea.vmem %s1595_s9, 144  ;;  %s1451_s8 = smov [#allocation2]  }
  0x49   : > { %p1328_p8 = scmp.ne.s32.totalorder %s1595_s9, %s1327_s6  ;;  %s1332_s14 = sshll.u32 %s1451_s8, 4  ;;  %s1333_s14 = int_to_ptr.vmem [resolvable:$false] %s1332_s14 }
  0x4a   : > { %s1334_s20 = scalar_lea.vmem %s1333_s14, 288  ;;  %p1335_p3 = scmp.lt.s32.totalorder %s1595_s9, %s1333_s14 }
  0x4b   : > { %p1330_p10 = pnand %p1328_p8, %p1314_p0  ;;  %p1336_p7 = scmp.lt.s32.totalorder %s1334_s20, %s1327_s6 }
  0x4d   : > { %p1331_p13 = pneg %p1330_p10  ;;  %p1337_p9 = por %p1336_p7, %p1335_p3 }
  0x4f   : > { %p1338_p1 = pnand %p1337_p9, %p1331_p13 }
  0x51   : > { %1341 = shalt.err (!%p1338_p1)
}
  0x52   : > { %s1452_s11 = smov 16   ;;  %s1453_s5 = smov 1  }
  0x53   : > { %1233 = dma.hbm_to_vmem [thread:$0]  (!%p1591_p11), %s1589_s29, 144, %s1595_s9, %s178_s10, %s1452_s11, %s1452_s11, %s1453_s5  }
  0x54   : > { %s198_s7 = sand.u32 1, %s1446_s18   ;;  %s1212_s25 = smul.u32 240, %s1582_s26 }
  0x55   : > { %s1213_s8 = smul.u32 3840, %s1446_s18  ;;  %s1635_s0 = scalar_lea.sflag [#allocation6], %s198_s7 }
  0x56   : > { %s202_s12 = scalar_lea.vmem [#allocation5], %s1212_s25  ;;  %s1347_s9 = scalar_lea.hbm %s2308_s1, 7680 }
  0x57   : > { %s1631_s20 = scalar_lea.hbm %s2308_s1, %s1213_s8  ;;  %s209_s13 = sshll.u32 %s202_s12, 4  ;;  %s1633_s13 = int_to_ptr.vmem [resolvable:$true] %s209_s13 }
  0x58   : > { %s1342_s2 = scalar_lea.hbm %s1631_s20, 3840  ;;  %p1348_p6 = scmp.lt.u32.totalorder %s1631_s20, %s2308_s1 }
  0x59   : > { %p1343_p5 = scmp.ne.s32.totalorder %s1631_s20, %s1342_s2  ;;  %p1349_p8 = scmp.lt.u32.totalorder %s1347_s9, %s1342_s2 }
  0x5a   : > { %p1351_p13 = scmp.lt.u32.totalorder %s1342_s2, %s1631_s20 }
  0x5b   : > { %p1345_p2 = pnand %p1343_p5, %p1314_p0  ;;  %p1350_p10 = por %p1349_p8, %p1348_p6 }
  0x5d   : > { %p1346_p4 = pneg %p1345_p2  ;;  %p1352_p3 = por %p1351_p13, %p1350_p10 }
  0x5f   : > { %p1353_p7 = pnand %p1352_p3, %p1346_p4 }
  0x61   : > { %1356 = shalt.err (!%p1353_p7)
}
  0x62   : > { %s1357_s12 = scalar_lea.vmem %s1633_s13, 3840  ;;  %s1454_s5 = smov [#allocation5]  }
  0x63   : > { %p1358_p9 = scmp.ne.s32.totalorder %s1633_s13, %s1357_s12  ;;  %s1362_s7 = sshll.u32 %s1454_s5, 4  ;;  %s1363_s7 = int_to_ptr.vmem [resolvable:$false] %s1362_s7 }
  0x64   : > { %s1364_s25 = scalar_lea.vmem %s1363_s7, 7680  ;;  %p1365_p2 = scmp.lt.s32.totalorder %s1633_s13, %s1363_s7 }
  0x65   : > { %p1360_p1 = pnand %p1358_p9, %p1314_p0  ;;  %p1366_p6 = scmp.lt.s32.totalorder %s1364_s25, %s1357_s12 }
  0x67   : > { %p1361_p5 = pneg %p1360_p1  ;;  %p1367_p8 = por %p1366_p6, %p1365_p2 }
  0x69   : > { %p1368_p10 = pnand %p1367_p8, %p1361_p5 }
  0x6b   : > { %1371 = shalt.err (!%p1368_p10)
}
  0x6c   : > { %s2339_s2 = smov 8   ;;  %s2340_s8 = smov 128  }
  0x6d   : > { %1236 = dma.hbm_to_vmem [thread:$0]  (!%p1591_p11), %s1631_s20, 3840, %s1633_s13, %s1635_s0, %s2340_s8, %s2340_s8, %s2339_s2  }
  0x6e   : > { %p2341_p0 = scmp.ne.s32.totalorder %s2332_s23, 0 }
  0x70   : > { %221 = sbr.rel (%p2341_p0) target bundleno = 454 (0x1c6), region = 36 }
  0x77   : > { %s1667_s6 = sand.u32 1, %s1438_s16   ;;  %p2342_p4 = scmp.ne.s32.totalorder %s2330_s21, 0 }
  0x78   : > { %s1214_s14 = smul.u32 9, %s1667_s6  ;;  %s224_s26 = scalar_lea.sflag [#allocation3], %s1667_s6 }
  0x7a   : > { %s1671_s29 = scalar_lea.vmem [#allocation2], %s1214_s14 }
  0x7b   : > { %1417 = dma.done.wait (%p2342_p4), %s224_s26, 144  }
  0x7c   : > { %1419 = vsyncadd (%p2342_p4), %s224_s26, 4294967152  ;;  %s232_s0 = sand.u32 1, %s1504_s19   ;;  %s1215_s23 = smul.u32 240, %s1667_s6 }
  0x7d   : > { %s233_s13 = scalar_lea.sflag [#allocation6], %s232_s0 }
  0x7e   : > { %s1679_s28 = scalar_lea.vmem [#allocation5], %s1215_s23 }
  0x7f   : > { %1421 = dma.done.wait (%p2342_p4), %s233_s13, 3840  }
  0x80   : > { %1423 = vsyncadd (%p2342_p4), %s233_s13, 4294963456  ;;  %p2343_p11 = scmp.eq.s32.totalorder %s1504_s19, 0 }
  0x82   : > { %1425 = dma.done.wait (%p2343_p11), [#allocation6], 2048   ;;  %p2344_p13 = pmov %p2343_p11 }
  0x83   : > { %v673_v0 = vld [vmem:[#allocation7] sm:$0xff]  ;;  %v674_v1 = vld [vmem:[#allocation7 + $0x8] sm:$0xff]  ;;  %v675_v2 = vld [vmem:[#allocation7 + $0x10] sm:$0xff]  ;;  %s1033_s9 = sshll.u32 %s1667_s6, 7  ;;  %s1073_s11 = sshll.u32 %s1504_s19, 11 }
  0x84   : > { %1427 = vsyncadd (%p2344_p13), [#allocation6], 4294965248  ;;  %v1162_v3 = vpack.c.bf16 %v674_v1, %v673_v0  ;;  %v676_v4 = vld [vmem:[#allocation7 + $0x18] sm:$0xff]  ;;  %v677_v6 = vld [vmem:[#allocation7 + $0x20] sm:$0xff]  ;;  %s2211_s10 = scalar_lea.vmem [#allocation8], %s1033_s9  ;;  %s2258_s25 = scalar_lea.hbm %s2311_s4, %s1073_s11 }
  0x85   : > { %v1166_v5 = vpack.c.bf16 %v676_v4, %v675_v2  ;;  %v678_v7 = vld [vmem:[#allocation7 + $0x28] sm:$0xff]  ;;  %v679_v8 = vld [vmem:[#allocation7 + $0x30] sm:$0xff]  ;;  %v680_v9 = vld [vmem:[#allocation7 + $0x38] sm:$0xff]  ;;  %s920_s12 = sshll.u32 %s2211_s10, 4  ;;  %s907_s19 = scalar_lea.sflag [#allocation4], %s1667_s6  ;;  %s2260_s12 = int_to_ptr.vmem [resolvable:$true] %s920_s12 }
  0x86   : > { %1163 = vmatprep.subr.bf16.mxu0 %v1162_v3  ;;  %1194 = vmatprep.subr.bf16.mxu1 %v1162_v3  ;;  %v681_v10 = vld [vmem:[#allocation7 + $0x40] sm:$0xff]  ;;  %v682_v11 = vld [vmem:[#allocation7 + $0x48] sm:$0xff]  ;;  %v683_v12 = vld [vmem:[#allocation7 + $0x50] sm:$0xff]  ;;  %v1170_v14 = vpack.c.bf16 %v678_v7, %v677_v6  ;;  %v1174_v28 = vpack.c.bf16 %v680_v9, %v679_v8  ;;  %s1372_s2 = scalar_lea.vmem %s2260_s12, 2048  ;;  %s1455_s8 = smov [#allocation8]  }
  0x87   : > { %1165 = vmatpush3.bf16.msra.mxu0 %v1162_v3  ;;  %1202 = vmatpush3.bf16.msra.mxu1 %v1162_v3  ;;  %v684_v13 = vld [vmem:[#allocation7 + $0x58] sm:$0xff]  ;;  %v685_v15 = vld [vmem:[#allocation7 + $0x60] sm:$0xff]  ;;  %v686_v16 = vld [vmem:[#allocation7 + $0x68] sm:$0xff]  ;;  %v1704_v29 = vpack.c.bf16 %v682_v11, %v681_v10  ;;  %p1373_p3 = scmp.ne.s32.totalorder %s2260_s12, %s1372_s2  ;;  %s1376_s14 = sshll.u32 %s1455_s8, 4  ;;  %s1377_s14 = int_to_ptr.vmem [resolvable:$false] %s1376_s14 }
  0x88   : > { %1167 = vmatprep.subr.bf16.mxu0 %v1166_v5  ;;  %1195 = vmatprep.subr.bf16.mxu1 %v1166_v5  ;;  %v687_v17 = vld [vmem:[#allocation7 + $0x70] sm:$0xff]  ;;  %v272_v19 = vld [vmem:[%s1679_s28 + $0x18] sm:$0xff]  ;;  %v1711_v32 = vld [vmem:[%s1671_s29 + $0x1] ss:$0 sm:$0xff]  ;;  %v1716_v34 = vpack.c.bf16 %v684_v13, %v683_v12  ;;  %v1725_v39 = vpack.c.bf16 %v686_v16, %v685_v15  ;;  %s1378_s26 = scalar_lea.vmem %s1377_s14, 4096  ;;  %p1379_p1 = scmp.lt.s32.totalorder %s2260_s12, %s1377_s14 }
  0x89   : > { %v270_v18 = vld [vmem:[%s1679_s28] sm:$0xff]  ;;  %v274_v20 = vld [vmem:[%s1679_s28 + $0x30] sm:$0xff]  ;;  %v688_v23 = vld [vmem:[#allocation7 + $0x78] sm:$0xff]  ;;  %p1374_p7 = pnand %p1373_p3, %p1577_p12  ;;  %p1380_p5 = scmp.lt.s32.totalorder %s1378_s26, %s1372_s2 }
  0x8a   : > { %v1693_v21 = vld [vmem:[%s1671_s29] ss:$0 sm:$0xff]  ;;  %v1696_v22 = vld [vmem:[%s1671_s29 + $0x3] ss:$0 sm:$0xff]  ;;  %v1701_v26 = vld [vmem:[%s1671_s29 + $0x6] ss:$0 sm:$0xff]  ;;  %v1727_v40 = vpack.c.bf16 %v688_v23, %v687_v17 }
  0x8b   : > { %v297_v24 = vmul.f32 %v1693_v21, %v270_v18  ;;  %v321_v25 = vmul.f32 %v1696_v22, %v272_v19  ;;  %v393_v27 = vld [vmem:[%s1679_s28 + $0x1] sm:$0xff]  ;;  %1169 = vmatpush3.bf16.msra.mxu0 %v1166_v5  ;;  %1203 = vmatpush3.bf16.msra.mxu1 %v1166_v5  ;;  %v361_v30 = vmul.f32 %v1701_v26, %v274_v20  ;;  %v1708_v31 = vld [vmem:[%s1679_s28 + $0x19] sm:$0xff]  ;;  %v1714_v33 = vld [vmem:[%s1671_s29 + $0x4] ss:$0 sm:$0xff]  ;;  %p1375_p9 = pneg %p1374_p7  ;;  %p1381_p2 = por %p1380_p5, %p1379_p1 }
  0x8c   : > { %2345 = vst [vmem:[#allocation13_spill] sm:$0xff] %v1708_v31  ;;  %1171 = vmatprep.subr.bf16.mxu0 %v1170_v14  ;;  %1196 = vmatprep.subr.bf16.mxu1 %v1170_v14  ;;  %v1719_v36 = vld [vmem:[%s1679_s28 + $0x31] sm:$0xff]  ;;  %v421_v37 = vmul.f32 %v1711_v32, %v393_v27  ;;  %v1730_v41 = vmul.f32 %v1693_v21, %v272_v19  ;;  %v533_v43 = vld [vmem:[%s1679_s28 + $0x2] sm:$0xff]  ;;  %v535_v44 = vld [vmem:[%s1679_s28 + $0x1a] sm:$0xff] }
  0x8d   : > { %v337_v35 = vadd.f32 %v321_v25, %v297_v24  ;;  %2346 = vst [vmem:[#allocation14_spill] sm:$0xff] %v1719_v36  ;;  %v1723_v38 = vld [vmem:[%s1671_s29 + $0x7] ss:$0 sm:$0xff]  ;;  %v1733_v42 = vmul.f32 %v1693_v21, %v274_v20  ;;  %v1738_v45 = vld [vmem:[%s1671_s29 + $0x2] ss:$0 sm:$0xff]  ;;  %v1741_v46 = vmul.f32 %v1696_v22, %v274_v20  ;;  %v1745_v48 = vmul.f32 %v1711_v32, %v1708_v31  ;;  %v1751_v51 = vld [vmem:[%s1679_s28 + $0x60] sm:$0xff]  ;;  %p1382_p6 = pnand %p1381_p2, %p1375_p9 }
  0x8e   : > { %v461_v49 = vmul.f32 %v1714_v33, %v1708_v31  ;;  %v537_v50 = vld [vmem:[%s1679_s28 + $0x32] sm:$0xff]  ;;  %v1758_v53 = vmul.f32 %v1711_v32, %v1719_v36  ;;  %v1762_v54 = vmul.f32 %v1714_v33, %v1719_v36  ;;  %v501_v55 = vmul.f32 %v1723_v38, %v1719_v36  ;;  %v1777_v62 = vld [vmem:[%s1679_s28 + $0x61] sm:$0xff]  ;;  %v394_v25 = vld [vmem:[%s1679_s28 + $0x9] sm:$0xff] }
  0x8f   : > { %v377_v47 = vadd.f32 %v361_v30, %v337_v35  ;;  %v1754_v52 = vld [vmem:[%s1679_s28 + $0x78] sm:$0xff]  ;;  %1173 = vmatpush3.bf16.msra.mxu0 %v1170_v14  ;;  %1204 = vmatpush3.bf16.msra.mxu1 %v1170_v14  ;;  %v1767_v56 = vld [vmem:[%s1671_s29 + $0x5] ss:$0 sm:$0xff]  ;;  %v1770_v57 = vld [vmem:[%s1671_s29 + $0x8] ss:$0 sm:$0xff]  ;;  %v561_v60 = vmul.f32 %v1738_v45, %v533_v43  ;;  %v305_v61 = vmul.f32 %v1693_v21, %v1751_v51 }
  0x90   : > { %2347 = vst [vmem:[#allocation15_spill] sm:$0xff] %v1754_v52  ;;  %v282_v58 = vld [vmem:[%s1679_s28 + $0x90] sm:$0xff]  ;;  %1175 = vmatprep.subr.bf16.mxu0 %v1174_v28  ;;  %1197 = vmatprep.subr.bf16.mxu1 %v1174_v28  ;;  %v1780_v63 = vmul.f32 %v1738_v45, %v535_v44  ;;  %v1783_v0 = vmul.f32 %v1738_v45, %v537_v50  ;;  %v1794_v7 = vld [vmem:[%s1679_s28 + $0x79] sm:$0xff]  ;;  %v271_v12 = vld [vmem:[%s1679_s28 + $0x8] sm:$0xff] }
  0x91   : > { %v437_v59 = vadd.f32 %v421_v37, %v377_v47  ;;  %v329_v1 = vmul.f32 %v1696_v22, %v1754_v52  ;;  %v369_v2 = vmul.f32 %v1701_v26, %v282_v58  ;;  %v601_v4 = vmul.f32 %v1767_v56, %v535_v44  ;;  %2349 = vst [vmem:[#allocation17_spill] sm:$0xff] %v1794_v7  ;;  %v1800_v10 = vld [vmem:[%s1679_s28 + $0x91] sm:$0xff]  ;;  %v1806_v13 = vld [vmem:[%s1679_s28 + $0x20] sm:$0xff] }
  0x92   : > { %2348 = vst [vmem:[#allocation16_spill] sm:$0xff] %v1783_v0  ;;  %v1790_v5 = vmul.f32 %v1767_v56, %v537_v50  ;;  %v641_v6 = vmul.f32 %v1770_v57, %v537_v50  ;;  %v1797_v8 = vmul.f32 %v1693_v21, %v282_v58  ;;  %2350 = vst [vmem:[#allocation18_spill] sm:$0xff] %v1800_v10  ;;  %v1818_v17 = vld [vmem:[%s1679_s28 + $0x62] sm:$0xff]  ;;  %v1821_v18 = vld [vmem:[%s1679_s28 + $0x38] sm:$0xff] }
  0x93   : > { %v477_v3 = vadd.f32 %v461_v49, %v437_v59  ;;  %1177 = vmatpush3.bf16.msra.mxu0 %v1174_v28  ;;  %1205 = vmatpush3.bf16.msra.mxu1 %v1174_v28  ;;  %v345_v9 = vadd.f32 %v329_v1, %v305_v61  ;;  %v429_v11 = vmul.f32 %v1711_v32, %v1777_v62  ;;  %v1837_v30 = vld [vmem:[%s1679_s28 + $0x7a] sm:$0xff]  ;;  %v1852_v50 = vld [vmem:[%s1679_s28 + $0x68] sm:$0xff] }
  0x94   : > { %1179 = vmatprep.subr.bf16.mxu0 %v1704_v29  ;;  %1198 = vmatprep.subr.bf16.mxu1 %v1704_v29  ;;  %v1811_v15 = vmul.f32 %v1696_v22, %v282_v58  ;;  %v1815_v16 = vmul.f32 %v1711_v32, %v1794_v7  ;;  %v1825_v20 = vmul.f32 %v1711_v32, %v1800_v10  ;;  %v1849_v49 = vld [vmem:[%s1679_s28 + $0x21] sm:$0xff]  ;;  %v1864_v61 = vld [vmem:[%s1679_s28 + $0x98] sm:$0xff] }
  0x95   : > { %v517_v14 = vadd.f32 %v501_v55, %v477_v3  ;;  %v385_v19 = vadd.f32 %v369_v2, %v345_v9  ;;  %v469_v23 = vmul.f32 %v1714_v33, %v1794_v7  ;;  %v1831_v24 = vmul.f32 %v1714_v33, %v1800_v10  ;;  %2351 = vst [vmem:[#allocation19_spill] sm:$0xff] %v1837_v30  ;;  %v1877_v9 = vld [vmem:[%s1679_s28 + $0x39] sm:$0xff]  ;;  %v1945_v7 = vld [vmem:[%s1679_s28 + $0x50] sm:$0xff]  ;;  %v1948_v0 = vld [vmem:[%s1679_s28 + $0x82] sm:$0xff] }
  0x96   : > { %v509_v28 = vmul.f32 %v1723_v38, %v1800_v10  ;;  %v298_v35 = vmul.f32 %v1693_v21, %v271_v12  ;;  %v322_v37 = vmul.f32 %v1696_v22, %v1806_v13  ;;  %v569_v44 = vmul.f32 %v1738_v45, %v1818_v17  ;;  %v1913_v31 = vld [vmem:[%s1679_s28 + $0x99] sm:$0xff] }
  0x97   : > { %v577_v27 = vadd.f32 %v561_v60, %v517_v14  ;;  %1181 = vmatpush3.bf16.msra.mxu0 %v1704_v29  ;;  %1206 = vmatpush3.bf16.msra.mxu1 %v1704_v29  ;;  %v445_v43 = vadd.f32 %v429_v11, %v385_v19  ;;  %v362_v47 = vmul.f32 %v1701_v26, %v1821_v18  ;;  %v1857_v29 = vld [vmem:[%s1679_s28 + $0x92] sm:$0xff]  ;;  %v1861_v60 = vld [vmem:[%s1679_s28 + $0x80] sm:$0xff]  ;;  %v534_v19 = vld [vmem:[%s1679_s28 + $0xa] sm:$0xff] }
  0x98   : > { %1183 = vmatprep.subr.bf16.mxu0 %v1716_v34  ;;  %1199 = vmatprep.subr.bf16.mxu1 %v1716_v34  ;;  %v338_v58 = vadd.f32 %v322_v37, %v298_v35  ;;  %v422_v59 = vmul.f32 %v1711_v32, %v394_v25  ;;  %v1868_v2 = vmul.f32 %v1738_v45, %v1837_v30  ;;  %v1885_v25 = vld [vmem:[%s1679_s28 + $0x69] sm:$0xff] }
  0x99   : > { %v617_v55 = vadd.f32 %v601_v4, %v577_v27  ;;  %v485_v1 = vadd.f32 %v469_v23, %v445_v43  ;;  %v609_v3 = vmul.f32 %v1767_v56, %v1837_v30  ;;  %v1874_v4 = vmul.f32 %v1767_v56, %v1857_v29  ;;  %2352 = vst [vmem:[#allocation20_spill] sm:$0xff] %v1885_v25  ;;  %v1890_v35 = vld [vmem:[%s1679_s28 + $0x22] sm:$0xff] }
  0x9a   : > { %v378_v12 = vadd.f32 %v362_v47, %v338_v58  ;;  %v462_v14 = vmul.f32 %v1714_v33, %v1849_v49  ;;  %v306_v23 = vmul.f32 %v1693_v21, %v1852_v50  ;;  %v370_v37 = vmul.f32 %v1701_v26, %v1864_v61  ;;  %v1897_v43 = vld [vmem:[%s1679_s28 + $0x81] sm:$0xff] }
  0x9b   : > { %v657_v11 = vadd.f32 %v641_v6, %v617_v55  ;;  %1185 = vmatpush3.bf16.msra.mxu0 %v1716_v34  ;;  %1207 = vmatpush3.bf16.msra.mxu1 %v1716_v34  ;;  %v525_v27 = vadd.f32 %v509_v28, %v485_v1  ;;  %v330_v6 = vmul.f32 %v1696_v22, %v1861_v60  ;;  %v1906_v55 = vld [vmem:[%s1679_s28 + $0x48] sm:$0xff]  ;;  %v1909_v1 = vld [vmem:[%s1679_s28 + $0x3a] sm:$0xff] }
  0x9c   : > { %1187 = vmatprep.subr.bf16.mxu0 %v1725_v39  ;;  %1200 = vmatprep.subr.bf16.mxu1 %v1725_v39  ;;  %v649_v47 = vmul.f32 %v1770_v57, %v1857_v29  ;;  %v438_v34 = vadd.f32 %v422_v59, %v378_v12  ;;  %v502_v28 = vmul.f32 %v1723_v38, %v1877_v9 }
  0x9d   : > { %1138 = vmatprep.mubr.f32.mxu0 %v657_v11  ;;  %v585_v58 = vadd.f32 %v569_v44, %v525_v27  ;;  %v562_v10 = vmul.f32 %v1738_v45, %v534_v19  ;;  %v346_v36 = vadd.f32 %v330_v6, %v306_v23  ;;  %v430_v59 = vmul.f32 %v1711_v32, %v1885_v25  ;;  %v1926_v27 = vld [vmem:[%s1679_s28 + $0x6a] sm:$0xff] }
  0x9e   : > { %v478_v12 = vadd.f32 %v462_v14, %v438_v34  ;;  %v602_v30 = vmul.f32 %v1767_v56, %v1890_v35  ;;  %v470_v11 = vmul.f32 %v1714_v33, %v1897_v43  ;;  %v339_v44 = vadd.f32 %v1741_v46, %v1730_v41  ;;  %2353 = vst [vmem:[#allocation21_spill] sm:$0xff] %v1926_v27  ;;  %v1931_v6 = vld [vmem:[%s1679_s28 + $0x49] sm:$0xff] }
  0x9f   : > { %1189 = vmatpush3.bf16.msra.mxu0 %v1725_v39  ;;  %1208 = vmatpush3.bf16.msra.mxu1 %v1725_v39  ;;  %v625_v19 = vadd.f32 %v609_v3, %v585_v58  ;;  %v386_v23 = vadd.f32 %v370_v37, %v346_v36  ;;  %v363_v14 = vmul.f32 %v1701_v26, %v1906_v55  ;;  %v1934_v34 = vld [vmem:[%s1679_s28 + $0xa8] sm:$0xff] }
  0xa0   : > { %1191 = vmatprep.subr.bf16.mxu0 %v1727_v40  ;;  %1201 = vmatprep.subr.bf16.mxu1 %v1727_v40  ;;  %v518_v41 = vadd.f32 %v502_v28, %v478_v12  ;;  %v642_v39 = vmul.f32 %v1770_v57, %v1909_v1  ;;  %v510_v36 = vmul.f32 %v1723_v38, %v1913_v31 }
  0xa1   : > { %v665_v46 = vadd.f32 %v649_v47, %v625_v19  ;;  %v446_v3 = vadd.f32 %v430_v59, %v386_v23  ;;  %v379_v37 = vadd.f32 %v363_v14, %v339_v44  ;;  %v307_v58 = vmul.f32 %v1693_v21, %v1754_v52  ;;  %v1959_v44 = vld [vmem:[%s1679_s28 + $0x9a] sm:$0xff]  ;;  %v1964_v14 = vld [vmem:[%s1679_s28 + $0xa9] sm:$0xff] }
  0xa2   : > { %v578_v25 = vadd.f32 %v562_v10, %v518_v41  ;;  %v570_v28 = vmul.f32 %v1738_v45, %v1926_v27  ;;  %v503_v12 = vmul.f32 %v1723_v38, %v1931_v6  ;;  %v371_v47 = vmul.f32 %v1701_v26, %v1934_v34 }
  0xa3   : > { %1193 = vmatpush3.bf16.msra.mxu0 %v1727_v40  ;;  %1209 = vmatpush3.bf16.msra.mxu1 %v1727_v40  ;;  %v486_v59 = vadd.f32 %v470_v11, %v446_v3  ;;  %v439_v10 = vadd.f32 %v1745_v48, %v379_v37  ;;  %v347_v19 = vadd.f32 %v1811_v15, %v307_v58 }
  0xa4   : > { %1150 = vmatprep.mubr.f32.mxu1 %v665_v46  ;;  %v618_v23 = vadd.f32 %v602_v30, %v578_v25  ;;  %v300_v41 = vmul.f32 %v1693_v21, %v1806_v13  ;;  %v324_v27 = vmul.f32 %v1696_v22, %v1821_v18  ;;  %v364_v40 = vmul.f32 %v1701_v26, %v1945_v7  ;;  %v1976_v30 = vld [vmem:[%s1679_s28 + $0x4a] sm:$0xff] }
  0xa5   : > { %v526_v11 = vadd.f32 %v510_v36, %v486_v59  ;;  %v610_v48 = vmul.f32 %v1767_v56, %v1948_v0  ;;  %v479_v15 = vadd.f32 %v1762_v54, %v439_v10  ;;  %v387_v25 = vadd.f32 %v371_v47, %v347_v19  ;;  %v1986_v54 = vld [vmem:[%s1679_s28 + $0x51] sm:$0xff] }
  0xa6   : > { %v658_v46 = vadd.f32 %v642_v39, %v618_v23  ;;  %v650_v13 = vmul.f32 %v1770_v57, %v1959_v44  ;;  %v340_v3 = vadd.f32 %v324_v27, %v300_v41  ;;  %v424_v37 = vmul.f32 %v1711_v32, %v1849_v49  ;;  %v1989_v10 = vld [vmem:[%s1679_s28 + $0xb0] sm:$0xff] }
  0xa7   : > { %v586_v58 = vadd.f32 %v570_v28, %v526_v11  ;;  %v519_v52 = vadd.f32 %v503_v12, %v479_v15  ;;  %v447_v36 = vadd.f32 %v1815_v16, %v387_v25  ;;  %v511_v59 = vmul.f32 %v1723_v38, %v1964_v14  ;;  %v2000_v23 = vld [vmem:[%s1679_s28 + $0xaa] sm:$0xff] }
  0xa8   : > { %1139 = vmatmul.mubr.f32.vlgmr.msra.gmra.mrb[0].mxu0 %v658_v46  ;;  %v643_v39 = vmul.f32 %v1770_v57, %v1976_v30  ;;  %v380_v27 = vadd.f32 %v364_v40, %v340_v3  ;;  %v464_v47 = vmul.f32 %v1714_v33, %v1877_v9  ;;  %v308_v28 = vmul.f32 %v1693_v21, %v1861_v60 }
  0xa9   : > { %v626_v12 = vadd.f32 %v610_v48, %v586_v58  ;;  %v579_v16 = vadd.f32 %v1780_v63, %v519_v52  ;;  %v487_v19 = vadd.f32 %v1831_v24, %v447_v36  ;;  %v332_v41 = vmul.f32 %v1696_v22, %v1864_v61  ;;  %v2018_v58 = vld [vmem:[%s1679_s28 + $0x52] sm:$0xff] }
  0xaa   : > { %v440_v11 = vadd.f32 %v424_v37, %v380_v27  ;;  %v504_v40 = vmul.f32 %v1723_v38, %v1986_v54  ;;  %v372_v15 = vmul.f32 %v1701_v26, %v1989_v10  ;;  %v432_v48 = vmul.f32 %v1711_v32, %v1897_v43  ;;  %v2023_v27 = vld [vmem:[%s1679_s28 + $0xb1] sm:$0xff] }
  0xab   : > { %v666_v25 = vadd.f32 %v650_v13, %v626_v12  ;;  %v619_v52 = vadd.f32 %v1790_v5, %v579_v16  ;;  %v527_v63 = vadd.f32 %v511_v59, %v487_v19  ;;  %v348_v24 = vadd.f32 %v332_v41, %v308_v28  ;;  %v2035_v16 = vld [vmem:[%s1679_s28 + $0xc0] sm:$0xff] }
  0xac   : > { %v2013_v46 = vmul.f32 %v1738_v45, %v1857_v29  ;;  %v651_v3 = vmul.f32 %v1770_v57, %v2000_v23  ;;  %v480_v37 = vadd.f32 %v464_v47, %v440_v11  ;;  %v564_v36 = vmul.f32 %v1738_v45, %v1890_v35 }
  0xad   : > { %1151 = vmatmul.mubr.f32.vlgmr.msra.gmra.mrb[0].mxu1 %v666_v25  ;;  %v659_v5 = vadd.f32 %v643_v39, %v619_v52  ;;  %v587_v13 = vadd.f32 %v1868_v2, %v527_v63  ;;  %v388_v59 = vadd.f32 %v372_v15, %v348_v24  ;;  %v472_v29 = vmul.f32 %v1714_v33, %v1913_v31 }
  0xae   : > { %v520_v28 = vadd.f32 %v504_v40, %v480_v37  ;;  %v604_v12 = vmul.f32 %v1767_v56, %v1909_v1  ;;  %v325_v47 = vmul.f32 %v1696_v22, %v1906_v55  ;;  %v365_v35 = vmul.f32 %v1701_v26, %v1751_v51  ;;  %v2052_v37 = vld [vmem:[%s1679_s28 + $0xb2] sm:$0xff] }
  0xaf   : > { %1141 = vmatprep.mubr.f32.mxu0 %v659_v5  ;;  %v627_v2 = vadd.f32 %v1874_v4, %v587_v13  ;;  %v644_v39 = vmul.f32 %v1770_v57, %v2018_v58  ;;  %v448_v19 = vadd.f32 %v432_v48, %v388_v59  ;;  %v512_v41 = vmul.f32 %v1723_v38, %v2023_v27  ;;  %v2058_v13 = vld [vmem:[%s1679_s28 + $0xc1] sm:$0xff] }
  0xb0   : > { %v580_v11 = vadd.f32 %v564_v36, %v520_v28  ;;  %v572_v40 = vmul.f32 %v1738_v45, %v1948_v0  ;;  %v341_v15 = vadd.f32 %v325_v47, %v1733_v42  ;;  %v333_v25 = vmul.f32 %v1696_v22, %v1934_v34 }
  0xb1   : > { %v667_v52 = vadd.f32 %v651_v3, %v627_v2  ;;  %v488_v63 = vadd.f32 %v472_v29, %v448_v19  ;;  %v612_v4 = vmul.f32 %v1767_v56, %v1959_v44  ;;  %v373_v48 = vmul.f32 %v1701_v26, %v2035_v16 }
  0xb2   : > { %v620_v24 = vadd.f32 %v604_v12, %v580_v11  ;;  %v381_v36 = vadd.f32 %v365_v35, %v341_v15  ;;  %v465_v5 = vmul.f32 %v1714_v33, %v1931_v6  ;;  %v349_v42 = vadd.f32 %v333_v25, %v1797_v8  ;;  %v2079_v25 = vld [vmem:[%s1679_s28 + $0xc8] sm:$0xff] }
  0xb3   : > { %1153 = vmatprep.mubr.f32.mxu1 %v667_v52  ;;  %v528_v3 = vadd.f32 %v512_v41, %v488_v63  ;;  %v505_v59 = vmul.f32 %v1723_v38, %v1777_v62  ;;  %v473_v29 = vmul.f32 %v1714_v33, %v1964_v14  ;;  %v302_v28 = vmul.f32 %v1693_v21, %v1821_v18 }
  0xb4   : > { %v660_v12 = vadd.f32 %v644_v39, %v620_v24  ;;  %v441_v47 = vadd.f32 %v1758_v53, %v381_v36  ;;  %v389_v35 = vadd.f32 %v373_v48, %v349_v42  ;;  %v326_v8 = vmul.f32 %v1696_v22, %v1945_v7 }
  0xb5   : > { %v588_v2 = vadd.f32 %v572_v40, %v528_v3  ;;  %v652_v19 = vmul.f32 %v1770_v57, %v2052_v37  ;;  %v513_v41 = vmul.f32 %v1723_v38, %v2058_v13  ;;  %v366_v11 = vmul.f32 %v1701_v26, %v1852_v50 }
  0xb6   : > { %1142 = vmatmul.mubr.f32.gmra.mrb[2].mxu0 %v660_v12  ;;  %v481_v18 = vadd.f32 %v465_v5, %v441_v47  ;;  %v449_v39 = vadd.f32 %v1825_v20, %v389_v35  ;;  %v342_v53 = vadd.f32 %v326_v8, %v302_v28  ;;  %v426_v15 = vmul.f32 %v1711_v32, %v1877_v9  ;;  %v2088_v5 = vld [vmem:[%s1679_s28 + $0xc2] sm:$0xff] }
  0xb7   : > { %v628_v40 = vadd.f32 %v612_v4, %v588_v2  ;;  %v605_v52 = vmul.f32 %v1767_v56, %v1976_v30  ;;  %v645_v63 = vmul.f32 %v1770_v57, %v1818_v17  ;;  %v466_v48 = vmul.f32 %v1714_v33, %v1986_v54  ;;  %v2354_v47 = vld [vmem:[#allocation16_spill] sm:$0xff] }
  0xb8   : > { %v521_v24 = vadd.f32 %v505_v59, %v481_v18  ;;  %v489_v36 = vadd.f32 %v473_v29, %v449_v39  ;;  %v382_v20 = vadd.f32 %v366_v11, %v342_v53  ;;  %v310_v42 = vmul.f32 %v1693_v21, %v1864_v61  ;;  %v2355_v8 = vld [vmem:[#allocation20_spill] sm:$0xff] }
  0xb9   : > { %v668_v3 = vadd.f32 %v652_v19, %v628_v40  ;;  %v613_v4 = vmul.f32 %v1767_v56, %v2000_v23  ;;  %v334_v28 = vmul.f32 %v1696_v22, %v1989_v10  ;;  %v374_v12 = vmul.f32 %v1701_v26, %v2079_v25 }
  0xba   : > { %v581_v59 = vadd.f32 %v2354_v47, %v521_v24  ;;  %v529_v29 = vadd.f32 %v513_v41, %v489_v36  ;;  %v442_v35 = vadd.f32 %v426_v15, %v382_v20  ;;  %v506_v2 = vmul.f32 %v1723_v38, %v2355_v8  ;;  %v2109_v15 = vld [vmem:[%s1679_s28 + $0xc9] sm:$0xff] }
  0xbb   : > { %1154 = vmatmul.mubr.f32.gmra.mrb[2].mxu1 %v668_v3  ;;  %v653_v61 = vmul.f32 %v1770_v57, %v2088_v5  ;;  %v566_v19 = vmul.f32 %v1738_v45, %v1909_v1  ;;  %v350_v11 = vadd.f32 %v334_v28, %v310_v42  ;;  %v434_v18 = vmul.f32 %v1711_v32, %v1913_v31  ;;  %v2356_v20 = vld [vmem:[#allocation15_spill] sm:$0xff] }
  0xbc   : > { %v621_v39 = vadd.f32 %v605_v52, %v581_v59  ;;  %v589_v53 = vadd.f32 %v2013_v46, %v529_v29  ;;  %v482_v41 = vadd.f32 %v466_v48, %v442_v35  ;;  %v474_v40 = vmul.f32 %v1714_v33, %v2023_v27  ;;  %v288_v59 = vld [vmem:[%s1679_s28 + $0xd8] sm:$0xff]  ;;  %v2357_v35 = vld [vmem:[#allocation21_spill] sm:$0xff] }
  0xbd   : > { %v390_v24 = vadd.f32 %v374_v12, %v350_v11  ;;  %v303_v36 = vmul.f32 %v1693_v21, %v1906_v55  ;;  %v327_v1 = vmul.f32 %v1696_v22, %v1751_v51  ;;  %v367_v52 = vmul.f32 %v1701_v26, %v2356_v20 }
  0xbe   : > { %v661_v42 = vadd.f32 %v645_v63, %v621_v39  ;;  %v629_v46 = vadd.f32 %v613_v4, %v589_v53  ;;  %v522_v3 = vadd.f32 %v506_v2, %v482_v41  ;;  %v606_v48 = vmul.f32 %v1767_v56, %v2018_v58  ;;  %v2129_v4 = vld [vmem:[%s1679_s28 + $0xca] sm:$0xff] }
  0xbf   : > { %v450_v28 = vadd.f32 %v434_v18, %v390_v24  ;;  %v514_v12 = vmul.f32 %v1723_v38, %v2109_v15  ;;  %v343_v47 = vadd.f32 %v327_v1, %v303_v36  ;;  %v427_v55 = vmul.f32 %v1711_v32, %v1931_v6  ;;  %v2358_v1 = vld [vmem:[#allocation17_spill] sm:$0xff] }
  0xc0   : > { %1144 = vmatprep.mubr.f32.mxu0 %v661_v42  ;;  %v669_v51 = vadd.f32 %v653_v61, %v629_v46  ;;  %v582_v29 = vadd.f32 %v566_v19, %v522_v3  ;;  %v646_v63 = vmul.f32 %v1770_v57, %v2357_v35  ;;  %v574_v2 = vmul.f32 %v1738_v45, %v1959_v44  ;;  %v411_v46 = vld [vmem:[%s1679_s28 + $0xd9] sm:$0xff] }
  0xc1   : > { %v490_v11 = vadd.f32 %v474_v40, %v450_v28  ;;  %v383_v18 = vadd.f32 %v367_v52, %v343_v47  ;;  %v467_v39 = vmul.f32 %v1714_v33, %v1777_v62  ;;  %v311_v53 = vmul.f32 %v1693_v21, %v1934_v34 }
  0xc2   : > { %1156 = vmatprep.mubr.f32.mxu1 %v669_v51  ;;  %v622_v61 = vadd.f32 %v606_v48, %v582_v29  ;;  %v614_v19 = vmul.f32 %v1767_v56, %v2052_v37  ;;  %v335_v41 = vmul.f32 %v1696_v22, %v2035_v16  ;;  %v375_v24 = vmul.f32 %v1701_v26, %v288_v59 }
  0xc3   : > { %v530_v44 = vadd.f32 %v514_v12, %v490_v11  ;;  %v654_v40 = vmul.f32 %v1770_v57, %v2129_v4  ;;  %v443_v36 = vadd.f32 %v427_v55, %v383_v18  ;;  %v507_v20 = vmul.f32 %v1723_v38, %v2358_v1 }
  0xc4   : > { %v662_v52 = vadd.f32 %v646_v63, %v622_v61  ;;  %v567_v34 = vmul.f32 %v1738_v45, %v1976_v30  ;;  %v351_v42 = vadd.f32 %v335_v41, %v311_v53  ;;  %v435_v16 = vmul.f32 %v1711_v32, %v1964_v14  ;;  %v2359_v63 = vld [vmem:[#allocation19_spill] sm:$0xff] }
  0xc5   : > { %v590_v3 = vadd.f32 %v574_v2, %v530_v44  ;;  %v483_v48 = vadd.f32 %v467_v39, %v443_v36  ;;  %v607_v28 = vmul.f32 %v1767_v56, %v1818_v17  ;;  %v304_v12 = vmul.f32 %v1693_v21, %v1945_v7  ;;  %v289_v7 = vld [vmem:[%s1679_s28 + $0xe0] sm:$0xff] }
  0xc6   : > { %1145 = vmatmul.mubr.f32.gmra.mrb[4].mxu0 %v662_v52  ;;  %v391_v47 = vadd.f32 %v375_v24, %v351_v42  ;;  %v475_v55 = vmul.f32 %v1714_v33, %v2058_v13  ;;  %v328_v30 = vmul.f32 %v1696_v22, %v1852_v50  ;;  %v368_v59 = vmul.f32 %v1701_v26, %v1861_v60  ;;  %v551_v24 = vld [vmem:[%s1679_s28 + $0xda] sm:$0xff] }
  0xc7   : > { %v630_v51 = vadd.f32 %v614_v19, %v590_v3  ;;  %v523_v29 = vadd.f32 %v507_v20, %v483_v48  ;;  %v647_v17 = vmul.f32 %v1770_v57, %v2359_v63  ;;  %v515_v2 = vmul.f32 %v1723_v38, %v411_v46 }
  0xc8   : > { %v451_v11 = vadd.f32 %v435_v16, %v391_v47  ;;  %v575_v18 = vmul.f32 %v1738_v45, %v2000_v23  ;;  %v344_v39 = vadd.f32 %v328_v30, %v304_v12  ;;  %v428_v50 = vmul.f32 %v1711_v32, %v1986_v54 }
  0xc9   : > { %v670_v53 = vadd.f32 %v654_v40, %v630_v51  ;;  %v583_v61 = vadd.f32 %v567_v34, %v523_v29  ;;  %v468_v60 = vmul.f32 %v1714_v33, %v2355_v8  ;;  %v312_v19 = vmul.f32 %v1693_v21, %v1989_v10 }
  0xca   : > { %v491_v41 = vadd.f32 %v475_v55, %v451_v11  ;;  %v384_v44 = vadd.f32 %v368_v59, %v344_v39  ;;  %v336_v36 = vmul.f32 %v1696_v22, %v2079_v25  ;;  %v376_v23 = vmul.f32 %v1701_v26, %v289_v7  ;;  %v412_v26 = vld [vmem:[%s1679_s28 + $0xe1] sm:$0xff] }
  0xcb   : > { %1157 = vmatmul.mubr.f32.gmra.mrb[4].mxu1 %v670_v53  ;;  %v623_v20 = vadd.f32 %v607_v28, %v583_v61  ;;  %v615_v40 = vmul.f32 %v1767_v56, %v2088_v5  ;;  %v508_v52 = vmul.f32 %v1723_v38, %v1897_v43  ;;  %v436_v10 = vmul.f32 %v1711_v32, %v2023_v27 }
  0xcc   : > { %v531_v34 = vadd.f32 %v515_v2, %v491_v41  ;;  %v444_v42 = vadd.f32 %v428_v50, %v384_v44  ;;  %v352_v21 = vadd.f32 %v336_v36, %v312_v19  ;;  %v655_v16 = vmul.f32 %v1770_v57, %v551_v24 }
  0xcd   : > { %v663_v46 = vadd.f32 %v647_v17, %v623_v20  ;;  %v568_v22 = vmul.f32 %v1738_v45, %v2018_v58  ;;  %v476_v48 = vmul.f32 %v1714_v33, %v2109_v15  ;;  %v608_v28 = vmul.f32 %v1767_v56, %v2357_v35  ;;  %v552_v33 = vld [vmem:[%s1679_s28 + $0xe2] sm:$0xff] }
  0xce   : > { %v591_v25 = vadd.f32 %v575_v18, %v531_v34  ;;  %v484_v3 = vadd.f32 %v468_v60, %v444_v42  ;;  %v392_v5 = vadd.f32 %v376_v23, %v352_v21  ;;  %v516_v55 = vmul.f32 %v1723_v38, %v412_v26  ;;  %v2203_v18 = vld [vmem:[%s2310_s3] ss:$0 sm:$0xff]  ;;  %v2360_v60 = vld [vmem:[#allocation13_spill] sm:$0xff] }
  0xcf   : > { %1147 = vmatprep.mubr.f32.mxu0 %v663_v46  ;;  %v648_v58 = vmul.f32 %v1770_v57, %v1948_v0  ;;  %v576_v29 = vmul.f32 %v1738_v45, %v2052_v37  ;;  %v616_v35 = vmul.f32 %v1767_v56, %v2129_v4  ;;  %v656_v38 = vmul.f32 %v1770_v57, %v552_v33 }
  0xd0   : > { %v631_v12 = vadd.f32 %v615_v40, %v591_v25  ;;  %v524_v32 = vadd.f32 %v508_v52, %v484_v3  ;;  %v452_v47 = vadd.f32 %v436_v10, %v392_v5 }
  0xd2   : > { %v671_v30 = vadd.f32 %v655_v16, %v631_v12  ;;  %v584_v59 = vadd.f32 %v568_v22, %v524_v32  ;;  %v492_v51 = vadd.f32 %v476_v48, %v452_v47  ;;  %v2361_v16 = vld [vmem:[#allocation14_spill] sm:$0xff] }
  0xd3   : > { %v2362_v48 = vld [vmem:[#allocation18_spill] sm:$0xff] }
  0xd4   : > { %1159 = vmatprep.mubr.f32.mxu1 %v671_v30  ;;  %v624_v63 = vadd.f32 %v608_v28, %v584_v59  ;;  %v532_v17 = vadd.f32 %v516_v55, %v492_v51 }
  0xd6   : > { %v664_v2 = vadd.f32 %v648_v58, %v624_v63  ;;  %v592_v7 = vadd.f32 %v576_v29, %v532_v17 }
  0xd8   : > { %1148 = vmatmul.mubr.f32.gmra.mrb[6].mxu0 %v664_v2  ;;  %v632_v0 = vadd.f32 %v616_v35, %v592_v7 }
  0xda   : > { %v672_v11 = vadd.f32 %v656_v38, %v632_v0 }
  0xdc   : > { %1160 = vmatmul.mubr.f32.gmra.mrb[6].mxu1 %v672_v11 }
 0x17b   : > { %v1140_v45 = vpop.f32.mrb[0].mxu0 }
 0x17c   : > { %v768_v37 = vadd.f32 %v1140_v45, %v2203_v18  ;;  %v762_v39 = vpop.f32.mrb[1].mxu0 }
 0x17d   : > { %v763_v56 = vadd.f32 %v2203_v18, %v762_v39 }
 0x17e   : > { %v842_v4 = vmax.f32 %v768_v37, 0.0 }
 0x17f   : > { %v841_v50 = vmax.f32 %v763_v56, 0.0 }
 0x180   : > { %v875_v57 = vadd.f32 %v842_v4, %v1849_v49  ;;  %v1152_v53 = vpop.f32.mrb[0].mxu1 }
 0x181   : > { %v808_v61 = vadd.f32 %v1152_v53, %v2203_v18  ;;  %v874_v19 = vadd.f32 %v841_v50, %v2360_v60  ;;  %v802_v41 = vpop.f32.mrb[1].mxu1 }
 0x182   : > { %891 = vst [vmem:[%s2211_s10 + $0x8] sm:$0xff] %v875_v57  ;;  %v803_v24 = vadd.f32 %v2203_v18, %v802_v41 }
 0x183   : > { %v850_v44 = vmax.f32 %v808_v61, 0.0  ;;  %890 = vst [vmem:[%s2211_s10] sm:$0xff] %v874_v19 }
 0x184   : > { %v849_v36 = vmax.f32 %v803_v24, 0.0 }
 0x185   : > { %v883_v49 = vadd.f32 %v850_v44, %v1897_v43 }
 0x186   : > { %v882_v23 = vadd.f32 %v849_v36, %v2358_v1 }
 0x187   : > { %899 = vst [vmem:[%s2211_s10 + $0x48] sm:$0xff] %v883_v49 }
 0x188   : > { %898 = vst [vmem:[%s2211_s10 + $0x40] sm:$0xff] %v882_v23 }
 0x189   : > { %v1143_v20 = vpop.f32.mrb[2].mxu0 }
 0x18a   : > { %v778_v40 = vadd.f32 %v1143_v20, %v2203_v18  ;;  %v772_v52 = vpop.f32.mrb[3].mxu0 }
 0x18b   : > { %v773_v34 = vadd.f32 %v2203_v18, %v772_v52 }
 0x18c   : > { %v844_v42 = vmax.f32 %v778_v40, 0.0 }
 0x18d   : > { %v843_v21 = vmax.f32 %v773_v34, 0.0 }
 0x18e   : > { %v877_v10 = vadd.f32 %v844_v42, %v1877_v9  ;;  %v1155_v46 = vpop.f32.mrb[2].mxu1 }
 0x18f   : > { %v818_v43 = vadd.f32 %v1155_v46, %v2203_v18  ;;  %v876_v1 = vadd.f32 %v843_v21, %v2361_v16  ;;  %v812_v22 = vpop.f32.mrb[3].mxu1 }
 0x190   : > { %893 = vst [vmem:[%s2211_s10 + $0x18] sm:$0xff] %v877_v10  ;;  %v813_v26 = vadd.f32 %v2203_v18, %v812_v22 }
 0x191   : > { %v852_v25 = vmax.f32 %v818_v43, 0.0  ;;  %892 = vst [vmem:[%s2211_s10 + $0x10] sm:$0xff] %v876_v1 }
 0x192   : > { %v851_v3 = vmax.f32 %v813_v26, 0.0 }
 0x193   : > { %v885_v5 = vadd.f32 %v852_v25, %v1913_v31 }
 0x194   : > { %v884_v28 = vadd.f32 %v851_v3, %v2362_v48 }
 0x195   : > { %901 = vst [vmem:[%s2211_s10 + $0x58] sm:$0xff] %v885_v5 }
 0x196   : > { %900 = vst [vmem:[%s2211_s10 + $0x50] sm:$0xff] %v884_v28 }
 0x199   : > { %v1146_v9 = vpop.f32.mrb[4].mxu0 }
 0x19a   : > { %v788_v12 = vadd.f32 %v1146_v9, %v2203_v18  ;;  %v782_v32 = vpop.f32.mrb[5].mxu0 }
 0x19b   : > { %v783_v47 = vadd.f32 %v2203_v18, %v782_v32 }
 0x19c   : > { %v846_v55 = vmax.f32 %v788_v12, 0.0 }
 0x19d   : > { %v845_v58 = vmax.f32 %v783_v47, 0.0 }
 0x19e   : > { %v879_v30 = vadd.f32 %v846_v55, %v1986_v54  ;;  %v1158_v59 = vpop.f32.mrb[4].mxu1 }
 0x19f   : > { %v828_v31 = vadd.f32 %v1158_v59, %v2203_v18  ;;  %v878_v51 = vadd.f32 %v845_v58, %v1931_v6  ;;  %v822_v29 = vpop.f32.mrb[5].mxu1 }
 0x1a0   : > { %895 = vst [vmem:[%s2211_s10 + $0x28] sm:$0xff] %v879_v30  ;;  %v823_v33 = vadd.f32 %v2203_v18, %v822_v29 }
 0x1a1   : > { %v854_v63 = vmax.f32 %v828_v31, 0.0  ;;  %894 = vst [vmem:[%s2211_s10 + $0x20] sm:$0xff] %v878_v51 }
 0x1a2   : > { %v853_v17 = vmax.f32 %v823_v33, 0.0 }
 0x1a3   : > { %v887_v35 = vadd.f32 %v854_v63, %v2023_v27 }
 0x1a4   : > { %v886_v2 = vadd.f32 %v853_v17, %v1964_v14 }
 0x1a5   : > { %903 = vst [vmem:[%s2211_s10 + $0x68] sm:$0xff] %v887_v35 }
 0x1a6   : > { %902 = vst [vmem:[%s2211_s10 + $0x60] sm:$0xff] %v886_v2 }
 0x1ab   : > { %v1149_v54 = vpop.f32.mrb[6].mxu0 }
 0x1ac   : > { %v798_v6 = vadd.f32 %v1149_v54, %v2203_v18  ;;  %v792_v7 = vpop.f32.mrb[7].mxu0 }
 0x1ad   : > { %v793_v38 = vadd.f32 %v2203_v18, %v792_v7 }
 0x1ae   : > { %v848_v0 = vmax.f32 %v798_v6, 0.0 }
 0x1af   : > { %v1161_v11 = vpop.f32.mrb[6].mxu1  ;;  %v847_v45 = vmax.f32 %v793_v38, 0.0 }
 0x1b0   : > { %v881_v27 = vadd.f32 %v848_v0, %v2355_v8  ;;  %v838_v14 = vadd.f32 %v1161_v11, %v2203_v18  ;;  %v832_v37 = vpop.f32.mrb[7].mxu1 }
 0x1b1   : > { %v880_v39 = vadd.f32 %v847_v45, %v1777_v62  ;;  %v833_v56 = vadd.f32 %v2203_v18, %v832_v37 }
 0x1b2   : > { %897 = vst [vmem:[%s2211_s10 + $0x38] sm:$0xff] %v881_v27  ;;  %v856_v4 = vmax.f32 %v838_v14, 0.0 }
 0x1b3   : > { %896 = vst [vmem:[%s2211_s10 + $0x30] sm:$0xff] %v880_v39  ;;  %v855_v50 = vmax.f32 %v833_v56, 0.0 }
 0x1b4   : > { %v889_v57 = vadd.f32 %v856_v4, %v2109_v15 }
 0x1b5   : > { %v888_v62 = vadd.f32 %v855_v50, %v2058_v13 }
 0x1b6   : > { %905 = vst [vmem:[%s2211_s10 + $0x78] sm:$0xff] %v889_v57 }
 0x1b7   : > { %904 = vst [vmem:[%s2211_s10 + $0x70] sm:$0xff] %v888_v62 }
 0x1b8   : > { %1385 = shalt.err (!%p1382_p6)
}
 0x1b9   : > { %s1386_s29 = scalar_lea.hbm %s2258_s25, 2048  ;;  %s1390_s13 = scalar_lea.hbm %s2311_s4, 4096 }
 0x1ba   : > { %p1387_p8 = scmp.ne.s32.totalorder %s2258_s25, %s1386_s29  ;;  %p1391_p4 = scmp.lt.u32.totalorder %s2258_s25, %s2311_s4 }
 0x1bb   : > { %p1392_p11 = scmp.lt.u32.totalorder %s1390_s13, %s1386_s29  ;;  %p1394_p3 = scmp.lt.u32.totalorder %s1386_s29, %s2258_s25 }
 0x1bc   : > { %p1388_p10 = pnand %p1387_p8, %p1577_p12 }
 0x1bd   : > { %p1393_p13 = por %p1392_p11, %p1391_p4 }
 0x1be   : > { %p1389_p0 = pneg %p1388_p10 }
 0x1bf   : > { %p1395_p7 = por %p1394_p3, %p1393_p13 }
 0x1c1   : > { %p1396_p9 = pnand %p1395_p7, %p1389_p0 }
 0x1c3   : > { %1399 = shalt.err (!%p1396_p9)
}
 0x1c4   : > { %s1456_s20 = smov 128   ;;  %s1457_s9 = smov 8  }
 0x1c5   : > { %1224 = dma.vmem_to_hbm [thread:$0]  (%p1577_p12), %s2260_s12, 2048, %s2258_s25, %s907_s19, %s1456_s20, %s1456_s20, %s1457_s9  }
 0x1c6 PF: > { %s935_s10 = sand.u32 1, %s1434_s15   ;;  %p2363_p1 = scmp.ne.s32.totalorder %s2331_s22, 0 }
 0x1c7   : > { %p2364_p5 = scmp.ge.s32.totalorder %s1446_s18, 2  ;;  %s936_s11 = scalar_lea.sflag [#allocation4], %s935_s10 }
 0x1c9   : > { %p1238_p2 = pnand %p2364_p5, %p2363_p1 }
 0x1cb   : > { %1429 = dma.done.wait (!%p1238_p2), %s936_s11, 2048  }
 0x1cc   : > { %1431 = vsyncadd (!%p1238_p2), %s936_s11, 4294965248  ;;  %p20_p6 = scmp.ge.s32.totalorder %s1539_s27, 4   ;;  %s2365_s15 = smov %s1438_s16 }
 0x1cd   : > { %s2366_s16 = smov %s1442_s17  ;;  %s2367_s17 = smov %s1573_s24 }
 0x1ce   : > { %s2368_s18 = smov %s1539_s27  ;;  %22 = sbr.rel (!%p20_p6) target bundleno = 10 (0xa), region = 107 }
 0x1d5   :  { %941 = vsyncpa [#allocation3], 1 }
 0x1d6   :  { %943 = vsyncpa [#allocation3 + $0x1], 1 }
 0x1d7   :  { %944 = vsyncpa [#allocation6], 1 }
 0x1d8   :  { %946 = vsyncpa [#allocation6 + $0x1], 1 }
 0x1d9   :  { %947 = vsyncpa [#allocation4], 1 }
 0x1da   :  { %949 = vsyncpa [#allocation4 + $0x1], 1 }

</bundles_post_ra>
